<compile_context>
chip_gen: v7x
topology: tpu7x:2x2x1
jax: 0.10.0
libtpu: 0.0.40
codegen_flags: <defaults>
</compile_context>

<pallas_src>
import math

import jax
import jax.numpy as jnp
from jax.experimental import pallas as pl
from jax.experimental.pallas import tpu as pltpu

LANES = 128
SUBLANES = 8
# Below this element count, a fused XLA mean beats a kernel launch.
_SMALL_INPUT_ELEMS = 64 * 1024


def _make_squared_hinge_kernel(rows_valid: int, tile_rows: int,
                               blocks_per_core: int):
    """Kernel body with static shape/schedule parameters baked in."""

    def kernel(yp_ref, yt_ref, out_ref, acc_ref):
        c = pl.program_id(0)   # core-parallel axis (v7x megacore split)
        j = pl.program_id(1)   # reduction (row-block) axis

        # Init / finalize guards key ONLY on the reduction-axis index.
        @pl.when(j == 0)
        def _():
            acc_ref[...] = jnp.zeros_like(acc_ref)

        # Cast in-kernel: bf16 inputs read at half the HBM bytes.
        yp = yp_ref[...].astype(jnp.float32)
        yt = yt_ref[...].astype(jnp.float32)

        hinge = jnp.maximum(1.0 - yt * yp, 0.0)
        sq = hinge * hinge

        # Row-validity mask: zeroes (a) garbage rows of the clamped boundary
        # block and (b) fully-redundant blocks on a core with no work left.
        # Pure VPU compare+select -> free under the HBM-bound roofline.
        g = c * blocks_per_core + j                    # unclamped global block
        row_ids = jax.lax.broadcasted_iota(jnp.int32, (tile_rows, LANES), 0)
        limit = rows_valid - g * tile_rows             # scalar
        sq = jnp.where(row_ids < limit, sq, 0.0)

        # vreg-sized accumulator: layout-compatible reshape, pure VPU adds,
        # no per-step XLU reduce and no tile-sized extra vld/vst.
        acc_ref[...] += sq.reshape(tile_rows // SUBLANES, SUBLANES,
                                   LANES).sum(axis=0)

        # Single cross-lane/sublane reduce per core, on its last step only.
        @pl.when(j == pl.num_programs(1) - 1)
        def _():
            out_ref[0, 0] = jnp.sum(acc_ref[...])

    return kernel


def squared_hinge_loss_mean(y_pred: jax.Array, y_true: jax.Array, *,
                            max_tile_rows: int = 8192,
                            num_cores: int = 2,
                            force_pallas: bool = False) -> jax.Array:
    """mean(maximum(1 - y_true * y_pred, 0) ** 2) as a Pallas TPU kernel.

    Inputs may be f32 or bf16 (do NOT upcast before calling); accumulation is
    always f32 in-kernel.
    """
    assert y_pred.shape == y_true.shape
    assert max_tile_rows % SUBLANES == 0
    total = math.prod(y_pred.shape)

    if total < _SMALL_INPUT_ELEMS and not force_pallas:
        # Kernel-launch/DMA setup dominates at this size; let XLA fuse it.
        ypf = y_pred.astype(jnp.float32)
        ytf = y_true.astype(jnp.float32)
        return jnp.mean(jnp.square(jnp.maximum(1.0 - ytf * ypf, 0.0)))

    rows = pl.cdiv(total, LANES)

    if rows <= max_tile_rows:
        # Single block per core: round rows up to a sublane multiple so the
        # (tile_rows, 128) block stays unmasked-aligned.
        tile_rows = ((rows + SUBLANES - 1) // SUBLANES) * SUBLANES
        padded_total = tile_rows * LANES
    else:
        tile_rows = max_tile_rows
        padded_total = rows * LANES   # lane pad only if total % 128 != 0
        # TODO(synk): a fully copy-free ragged path (total % 128 != 0) would
        # need 1-D blocks; the <=127-element lane pad below still copies.

    yp_flat = jnp.ravel(y_pred)
    yt_flat = jnp.ravel(y_true)
    if padded_total != total:
        pad = padded_total - total
        # Pad with 1.0 so padded elements contribute exactly 0:
        #   1 - 1*1 = 0  ->  max(0, 0)^2 = 0.
        yp_flat = jnp.concatenate([yp_flat, jnp.ones((pad,), yp_flat.dtype)])
        yt_flat = jnp.concatenate([yt_flat, jnp.ones((pad,), yt_flat.dtype)])

    rows2d = padded_total // LANES
    yp2d = yp_flat.reshape(rows2d, LANES)
    yt2d = yt_flat.reshape(rows2d, LANES)

    num_row_blocks = pl.cdiv(rows2d, tile_rows)
    n_cores = max(1, min(num_cores, num_row_blocks))
    blocks_per_core = pl.cdiv(num_row_blocks, n_cores)

    if n_cores * blocks_per_core == num_row_blocks:
        def in_map(c, j):
            return (c * blocks_per_core + j, 0)
    else:
        # Clamp redundant trailing blocks on the idle core onto a valid block;
        # the in-kernel row mask zeroes their contribution.
        def in_map(c, j):
            return (jnp.minimum(c * blocks_per_core + j, num_row_blocks - 1), 0)

    kernel = _make_squared_hinge_kernel(rows2d, tile_rows, blocks_per_core)

    partials = pl.pallas_call(
        kernel,
        out_shape=jax.ShapeDtypeStruct((n_cores, 1), jnp.float32),
        grid_spec=pltpu.PrefetchScalarGridSpec(
            num_scalar_prefetch=0,
            grid=(n_cores, blocks_per_core),
            in_specs=[
                pl.BlockSpec((tile_rows, LANES), in_map),
                pl.BlockSpec((tile_rows, LANES), in_map),
            ],
            out_specs=pl.BlockSpec((1, 1), lambda c, j: (c, 0),
                                   memory_space=pltpu.SMEM),
            scratch_shapes=[pltpu.VMEM((SUBLANES, LANES), jnp.float32)],
        ),
        compiler_params=pltpu.CompilerParams(
            dimension_semantics=("parallel", "arbitrary"),
            vmem_limit_bytes=32 * 1024 * 1024),
    )(yp2d, yt2d)

    # Combine per-core partial sums and take the mean over the TRUE count.
    return jnp.sum(partials) / jnp.float32(total)


if __name__ == "__main__":
    key = jax.random.PRNGKey(0)
    k1, k2, k3, k4 = jax.random.split(key, 4)

    def ref_loss(yp, yt):
        return jnp.mean(jnp.square(jnp.maximum(1.0 - yt * yp, 0.0)))

    # 1) Driver shape (2,4,16,16): single (16,128) block, grid (1,1).
    shape = (2, 4, 16, 16)
    y_pred = jax.random.normal(k1, shape, dtype=jnp.float32)
    y_true = jnp.where(jax.random.uniform(k2, shape) > 0.5, 1.0, -1.0).astype(
        jnp.float32)
    loss = jax.block_until_ready(
        squared_hinge_loss_mean(y_pred, y_true, force_pallas=True))
    ref = ref_loss(y_pred, y_true)
    assert jnp.allclose(loss, ref, atol=1e-6, rtol=1e-5), (loss, ref)

    # 2) Ragged size (total % 128 != 0): exercises the lane-pad + mask path.
    shape2 = (2, 3, 7, 11)
    yp2 = jax.random.normal(k3, shape2, dtype=jnp.float32)
    yt2 = jnp.where(jax.random.uniform(k4, shape2) > 0.5, 1.0, -1.0).astype(
        jnp.float32)
    loss2 = jax.block_until_ready(
        squared_hinge_loss_mean(yp2, yt2, force_pallas=True))
    ref2 = ref_loss(yp2, yt2)
    assert jnp.allclose(loss2, ref2, atol=1e-6, rtol=1e-5), (loss2, ref2)

    # 3) Multi-block + 2-way core split + clamped redundant block
    #    (small max_tile_rows override keeps it tiny).
    shape3 = (20, 128)
    yp3 = jax.random.normal(k1, shape3, dtype=jnp.float32)
    yt3 = jnp.where(jax.random.uniform(k2, shape3) > 0.5, 1.0, -1.0).astype(
        jnp.float32)
    loss3 = jax.block_until_ready(
        squared_hinge_loss_mean(yp3, yt3, max_tile_rows=8, force_pallas=True))
    ref3 = ref_loss(yp3, yt3)
    assert jnp.allclose(loss3, ref3, atol=1e-6, rtol=1e-5), (loss3, ref3)

    print("KERNEL_OK")
</pallas_src>

<mosaic_0001>
module attributes {stable_mosaic.version = 11 : i64} {
  func.func @kernel(%arg0: i32, %arg1: i32, %arg2: memref<16x128xf32, #tpu.memory_space<vmem>>, %arg3: memref<16x128xf32, #tpu.memory_space<vmem>>, %arg4: memref<1x1xf32, #tpu.memory_space<smem>>, %arg5: memref<8x128xf32, #tpu.memory_space<vmem>>) attributes {dimension_semantics = [#tpu.dimension_semantics<parallel>, #tpu.dimension_semantics<arbitrary>], iteration_bounds = array<i64: 1, 1>, scalar_prefetch = 0 : i64, scratch_operands = 1 : i64, tpu.core_type = #tpu.core_type<tc>, window_params = [{transform_indices = @transform_0, window_bounds = array<i64: 16, 128>}, {transform_indices = @transform_1, window_bounds = array<i64: 16, 128>}, {transform_indices = @transform_2, window_bounds = array<i64: 1, 1>}]} {
    %c0_i32 = arith.constant 0 : i32
    %0 = arith.cmpi eq, %arg1, %c0_i32 : i32
    %1 = arith.extui %0 : i1 to i32
    %c0_i32_0 = arith.constant 0 : i32
    %2 = arith.cmpi ne, %1, %c0_i32_0 : i32
    scf.if %2 {
      %cst_14 = arith.constant 0.000000e+00 : f32
      %28 = vector.broadcast %cst_14 : f32 to vector<8x128xf32>
      %c0_15 = arith.constant 0 : index
      %c0_16 = arith.constant 0 : index
      %29 = vector.load %arg5[%c0_15, %c0_16] : memref<8x128xf32, #tpu.memory_space<vmem>>, vector<8x128xf32>
      tpu.vector_store %arg5[%c0_15, %c0_16], %28 {strides = array<i32>} : memref<8x128xf32, #tpu.memory_space<vmem>>, vector<8x128xf32>,
    } else {
    }
    %c0 = arith.constant 0 : index
    %c0_1 = arith.constant 0 : index
    %3 = vector.load %arg2[%c0, %c0_1] : memref<16x128xf32, #tpu.memory_space<vmem>>, vector<16x128xf32>
    %c0_2 = arith.constant 0 : index
    %c0_3 = arith.constant 0 : index
    %4 = vector.load %arg3[%c0_2, %c0_3] : memref<16x128xf32, #tpu.memory_space<vmem>>, vector<16x128xf32>
    %5 = arith.mulf %4, %3 : vector<16x128xf32>
    %cst = arith.constant 1.000000e+00 : f32
    %6 = vector.broadcast %cst : f32 to vector<16x128xf32>
    %7 = arith.subf %6, %5 : vector<16x128xf32>
    %cst_4 = arith.constant 0.000000e+00 : f32
    %8 = vector.broadcast %cst_4 : f32 to vector<16x128xf32>
    %9 = arith.maximumf %7, %8 : vector<16x128xf32>
    %10 = arith.mulf %9, %9 : vector<16x128xf32>
    %c1_i32 = arith.constant 1 : i32
    %11 = arith.muli %arg0, %c1_i32 : i32
    %12 = arith.addi %11, %arg1 : i32
    %13 = tpu.iota {dimensions = array<i32: 0>} : vector<16x128xi32>
    %c16_i32 = arith.constant 16 : i32
    %14 = arith.muli %12, %c16_i32 : i32
    %c16_i32_5 = arith.constant 16 : i32
    %15 = arith.subi %c16_i32_5, %14 : i32
    %16 = vector.broadcast %15 : i32 to vector<16x128xi32>
    %17 = arith.cmpi slt, %13, %16 : vector<16x128xi32>
    %cst_6 = arith.constant 0.000000e+00 : f32
    %18 = vector.broadcast %cst_6 : f32 to vector<16x128xf32>
    %19 = arith.select %17, %10, %18 : vector<16x128xi1>, vector<16x128xf32>
    %c0_7 = arith.constant 0 : index
    %c0_8 = arith.constant 0 : index
    %20 = vector.load %arg5[%c0_7, %c0_8] : memref<8x128xf32, #tpu.memory_space<vmem>>, vector<8x128xf32>
    %21 = vector.shape_cast %19 : vector<16x128xf32> to vector<2x8x128xf32>
    %cst_9 = arith.constant dense<0.000000e+00> : vector<8x128xf32>
    %22 = vector.multi_reduction <add>, %21, %cst_9 [0] : vector<2x8x128xf32> to vector<8x128xf32>
    %23 = arith.addf %20, %22 : vector<8x128xf32>
    %c0_10 = arith.constant 0 : index
    %c0_11 = arith.constant 0 : index
    %24 = vector.load %arg5[%c0_10, %c0_11] : memref<8x128xf32, #tpu.memory_space<vmem>>, vector<8x128xf32>
    tpu.vector_store %arg5[%c0_10, %c0_11], %23 {strides = array<i32>} : memref<8x128xf32, #tpu.memory_space<vmem>>, vector<8x128xf32>,
    %c0_i32_12 = arith.constant 0 : i32
    %25 = arith.cmpi eq, %arg1, %c0_i32_12 : i32
    %26 = arith.extui %25 : i1 to i32
    %c0_i32_13 = arith.constant 0 : i32
    %27 = arith.cmpi ne, %26, %c0_i32_13 : i32
    scf.if %27 {
      %c0_14 = arith.constant 0 : index
      %c0_15 = arith.constant 0 : index
      %28 = vector.load %arg5[%c0_14, %c0_15] : memref<8x128xf32, #tpu.memory_space<vmem>>, vector<8x128xf32>
      %29 = vector.shape_cast %28 : vector<8x128xf32> to vector<1x8x128xf32>
      %cst_16 = arith.constant dense<0.000000e+00> : vector<1xf32>
      %30 = vector.multi_reduction <add>, %29, %cst_16 [1, 2] : vector<1x8x128xf32> to vector<1xf32>
      %31 = vector.shape_cast %30 : vector<1xf32> to vector<1x1x1xf32>
      %32 = vector.extract %31[0, 0, 0] : f32 from vector<1x1x1xf32>
      %c0_17 = arith.constant 0 : index
      %c0_18 = arith.constant 0 : index
      %33 = memref.load %arg4[%c0_17, %c0_18] : memref<1x1xf32, #tpu.memory_space<smem>>
      memref.store %32, %arg4[%c0_17, %c0_18] : memref<1x1xf32, #tpu.memory_space<smem>>
    } else {
    }
    return
  }
  func.func @transform_0(%arg0: i32, %arg1: i32) -> (i32, i32) {
    %c1_i32 = arith.constant 1 : i32
    %0 = arith.muli %arg0, %c1_i32 : i32
    %1 = arith.addi %0, %arg1 : i32
    %c0_i32 = arith.constant 0 : i32
    %c0_i32_0 = arith.constant 0 : i32
    return %1, %c0_i32 : i32, i32
  }
  func.func @transform_1(%arg0: i32, %arg1: i32) -> (i32, i32) {
    %c1_i32 = arith.constant 1 : i32
    %0 = arith.muli %arg0, %c1_i32 : i32
    %1 = arith.addi %0, %arg1 : i32
    %c0_i32 = arith.constant 0 : i32
    %c0_i32_0 = arith.constant 0 : i32
    return %1, %c0_i32 : i32, i32
  }
  func.func @transform_2(%arg0: i32, %arg1: i32) -> (i32, i32) {
    %c0_i32 = arith.constant 0 : i32
    %c0_i32_0 = arith.constant 0 : i32
    return %arg0, %c0_i32 : i32, i32
  }
}

</mosaic_0001>

<bundles_post_ra>
// kernel: tpu_custom_call.1
= control target key start
LH: loop header
LB: loop body
LE: loop exit
PB: predicated region body
PF: predicated region fallthrough
CT: control target
= control target key end

     0   :  { %7 = vsyncpa [#allocation4], 0  ;;  %s237_s0 = inlined_call_operand.hbm [shape: f32[16,128], index: 0, kind: input, shape index: {}]   ;;  %s238_s1 = inlined_call_operand.hbm [shape: f32[16,128], index: 1, kind: input, shape index: {}]   ;;  %s239_s2 = inlined_call_operand.hbm [shape: f32[1,1], index: 2, kind: output, shape index: {}]  }
   0x1   :  { %8 = vsyncpa [#allocation7], 0 }
   0x2   :  { %9 = vsyncpa [#allocation5], 0  ;;  %s181_s9 = smov [#allocation3]   ;;  %s121_s13 = scalar_lea.hbm %s237_s0, 256 }
   0x3   :  { %s19_s10 = sshll.u32 %s181_s9, 4  ;;  %p122_p0 = scmp.ne.s32.totalorder %s237_s0, %s121_s13  ;;  %s20_s10 = int_to_ptr.vmem [resolvable:$true] %s19_s10 }
   0x4   :  { %p125_p1 = scmp.lt.u32.totalorder %s121_s13, %s237_s0 }
   0x6   :  { %p127_p2 = pnand %p125_p1, %p122_p0 }
   0x8   :  { %130 = shalt.err (!%p127_p2)
}
   0x9   :  { %s131_s18 = scalar_lea.vmem %s20_s10, 256  ;;  %p136_p4 = scmp.lt.s32.totalorder %s20_s10, %s20_s10 }
   0xa   :  { %p132_p3 = scmp.ne.s32.totalorder %s20_s10, %s131_s18  ;;  %p137_p5 = scmp.lt.s32.totalorder %s131_s18, %s131_s18 }
   0xc   :  { %p138_p6 = por %p137_p5, %p136_p4 }
   0xe   :  { %p139_p7 = pnand %p138_p6, %p132_p3 }
  0x10   :  { %142 = shalt.err (!%p139_p7)
}
  0x11   :  { %s182_s19 = smov 128   ;;  %s183_s20 = smov 8  }
  0x12   :  { %25 = dma.hbm_to_vmem [thread:$0]  %s237_s0, 256, %s20_s10, [#allocation4], %s182_s19, %s182_s19, %s183_s20  }
  0x13   :  { %s184_s23 = smov [#allocation6]   ;;  %s143_s27 = scalar_lea.hbm %s238_s1, 256 }
  0x14   :  { %s35_s24 = sshll.u32 %s184_s23, 4  ;;  %p144_p8 = scmp.ne.s32.totalorder %s238_s1, %s143_s27  ;;  %s36_s24 = int_to_ptr.vmem [resolvable:$true] %s35_s24 }
  0x15   :  { %p147_p9 = scmp.lt.u32.totalorder %s143_s27, %s238_s1 }
  0x17   :  { %p149_p10 = pnand %p147_p9, %p144_p8 }
  0x19   :  { %152 = shalt.err (!%p149_p10)
}
  0x1a   :  { %s153_s4 = scalar_lea.vmem %s36_s24, 256  ;;  %p158_p12 = scmp.lt.s32.totalorder %s36_s24, %s36_s24 }
  0x1b   :  { %p154_p11 = scmp.ne.s32.totalorder %s36_s24, %s153_s4  ;;  %p159_p13 = scmp.lt.s32.totalorder %s153_s4, %s153_s4 }
  0x1d   :  { %p160_p0 = por %p159_p13, %p158_p12 }
  0x1f   :  { %p161_p1 = pnand %p160_p0, %p154_p11 }
  0x21   :  { %164 = shalt.err (!%p161_p1)
}
  0x22   :  { %41 = dma.hbm_to_vmem [thread:$0]  %s238_s1, 256, %s36_s24, [#allocation7], %s182_s19, %s182_s19, %s183_s20  }
  0x23   :  { %175 = dma.done.wait [#allocation4], 256  }
  0x24   :  { %176 = vsyncadd [#allocation4], 4294967040 }
  0x25   :  { %177 = dma.done.wait [#allocation7], 256  }
  0x26   :  { %178 = vsyncadd [#allocation7], 4294967040  ;;  %v57_v0 = vld [vmem:[#allocation3] sm:$0xff]  ;;  %v58_v1 = vld [vmem:[#allocation3 + $0x8] sm:$0xff]  ;;  %s165_s8 = scalar_lea.hbm %s239_s2, 16 }
  0x27   :  { %v59_v2 = vld [vmem:[#allocation6] sm:$0xff]  ;;  %v60_v3 = vld [vmem:[#allocation6 + $0x8] sm:$0xff]  ;;  %p166_p2 = scmp.ne.s32.totalorder %s239_s2, %s165_s8  ;;  %p169_p3 = scmp.lt.u32.totalorder %s165_s8, %s239_s2 }
  0x28   :  { %v61_v4 = vmul.f32 %v59_v2, %v57_v0  ;;  %v62_v5 = vmul.f32 %v60_v3, %v58_v1 }
  0x29   :  { %p171_p4 = pnand %p169_p3, %p166_p2 }
  0x2a   :  { %v63_v6 = vsub.f32 1.0, %v61_v4  ;;  %v64_v7 = vsub.f32 1.0, %v62_v5 }
  0x2c   :  { %v65_v8 = vmax.f32 %v63_v6, 0.0  ;;  %v66_v9 = vmax.f32 %v64_v7, 0.0 }
  0x2e   :  { %v67_v10 = vmul.f32 %v65_v8, %v65_v8  ;;  %v68_v11 = vmul.f32 %v66_v9, %v66_v9 }
  0x30   :  { %v81_v12 = vadd.f32 %v68_v11, %v67_v10 }
  0x32   :  { %88 = vadd.xlane.f32.xlu0 %v81_v12 }
  0xbf   :  { %v89_v13 = vpop.xlane.xlu0 %88 }
  0xc0   :  { %v90_v14 = vrot.slane %v89_v13, 4 }
  0xc2   :  { %v91_v15 = vadd.f32 %v90_v14, %v89_v13 }
  0xc4   :  { %v92_v16 = vrot.slane %v91_v15, 2 }
  0xc6   :  { %v93_v17 = vadd.f32 %v92_v16, %v91_v15 }
  0xc8   :  { %v94_v18 = vrot.slane %v93_v17, 1 }
  0xca   :  { %v95_v19 = vadd.f32 %v94_v18, %v93_v17 }
  0xcc   :  { %114 = vpush %v95_v19 }
  0xfd   :  { %s115_s1 = spop %114 }
  0xfe   :  { %98 = sst [smem:[#allocation8]] %s115_s1 }
  0xff   :  { %174 = shalt.err (!%p171_p4)
}
 0x100   :  { %s185_s13 = smov [#allocation8]  }
 0x101   :  { %106 = dma.smem_to_hbm %s185_s13, 16, %s239_s2, [#allocation5]  }
 0x102   :  { %179 = dma.done.wait [#allocation5], 16  }
 0x103   :  { %180 = vsyncadd [#allocation5], 4294967280 }
 0x104   :  { %110 = sfence }
 0x105   :  { %111 = vsyncpa [#allocation4], 1 }
 0x106   :  { %112 = vsyncpa [#allocation7], 1 }
 0x107   :  { %113 = vsyncpa [#allocation5], 1 }

</bundles_post_ra>
